<compile_context>
chip_gen: v5e
topology: v5e:2x2
jax: 0.10.0
libtpu: 0.0.40
codegen_flags: <defaults>
</compile_context>

<pallas_src>
import jax
import jax.numpy as jnp
from jax.experimental import pallas as pl
from jax.experimental.pallas import tpu as pltpu


def _round_up(n, m):
    return ((n + m - 1) // m) * m


def mlp_kernel(x_ref, w1_ref, b1_ref, w2_ref, b2_ref, w3_ref, b3_ref, o_ref):
    x = x_ref[...]

    # fc1 + relu  (biases are (1, H) rows -> broadcast along sublanes for free)
    h1 = jnp.dot(x, w1_ref[...], preferred_element_type=jnp.float32)
    h1 = jnp.maximum(h1 + b1_ref[...], 0.0)

    # fc2 + relu
    h2 = jnp.dot(h1, w2_ref[...], preferred_element_type=jnp.float32)
    h2 = jnp.maximum(h2 + b2_ref[...], 0.0)

    # fc3 (no activation), narrow (out_size-lane) store
    out = jnp.dot(h2, w3_ref[...], preferred_element_type=jnp.float32)
    o_ref[...] = (out + b3_ref[...]).astype(o_ref.dtype)


def _pick_tb(bp, tb_max):
    """Pick the batch tile:
       - multiple of 8 (f32 sublane)
       - exactly divides bp (no tail block, no tile-pad copy)
       - <= tb_max (default 2048; per-block VMEM stays a few MiB)
       - <= ceil(bp/2) when bp allows, so the parallel grid has >= 2 steps
         (lets v7x split the batch across its 2 TensorCores)."""
    assert bp % 8 == 0
    target = min(tb_max, max(8, _round_up((bp + 1) // 2, 8)))
    m = bp // 8
    limit = max(1, target // 8)
    best = 1
    for d in range(1, limit + 1):
        if m % d == 0:
            best = d
    return 8 * best


def network_forward(x, params, *, tb=2048):
    """Pallas implementation of Network.forward(x).

    x: [B, input_size] float32
    params: (w1 [in,64], b1 [64], w2 [64,64], b2 [64], w3 [64,out], b3 [out])
            (PyTorch Linear weights stored transposed: y = x @ w + b)
    """
    w1, b1, w2, b2, w3, b3 = params
    B, in_size = x.shape
    hidden = w1.shape[1]
    out_size = w3.shape[1]

    # biases as (1, H) rows -> sublane broadcast inside the kernel
    b1_2d = b1.reshape(1, hidden)
    b2_2d = b2.reshape(1, hidden)
    b3_2d = b3.reshape(1, out_size)

    # batch tiling: minimal 8-row alignment only; TB divides Bp exactly
    Bp = _round_up(B, 8)
    TB = _pick_tb(Bp, tb)
    if Bp != B:
        x_in = jnp.zeros((Bp, in_size), x.dtype).at[:B, :].set(x)
    else:
        x_in = x

    grid = (Bp // TB,)

    # weights / biases: constant index_map -> stay resident in VMEM across steps
    const = lambda a: pl.BlockSpec(a.shape, lambda i: (0,) * a.ndim)

    itemsize = 4  # all f32
    cost = pl.CostEstimate(
        flops=2 * Bp * (in_size * hidden + hidden * hidden + hidden * out_size),
        transcendentals=0,
        bytes_accessed=itemsize * (Bp * in_size + Bp * out_size
                                   + w1.size + b1.size + w2.size + b2.size
                                   + w3.size + b3.size),
    )

    out = pl.pallas_call(
        mlp_kernel,
        out_shape=jax.ShapeDtypeStruct((Bp, out_size), jnp.float32),
        grid=grid,
        in_specs=[
            pl.BlockSpec((TB, in_size), lambda i: (i, 0)),   # x: tiled over batch
            const(w1), const(b1_2d),
            const(w2), const(b2_2d),
            const(w3), const(b3_2d),
        ],
        out_specs=pl.BlockSpec((TB, out_size), lambda i: (i, 0)),
        compiler_params=pltpu.CompilerParams(
            dimension_semantics=("parallel",)),
        cost_estimate=cost,
    )(x_in, w1, b1_2d, w2, b2_2d, w3, b3_2d)

    if Bp != B:
        out = out[:B]
    return out


def init_params(key, input_size, output_size, hidden=64):
    """Deterministic synthetic init (matches nn.Linear shapes, stored transposed)."""
    ks = jax.random.split(key, 6)

    def uniform(k, shape, fan_in):
        bound = 1.0 / jnp.sqrt(jnp.float32(fan_in))
        return jax.random.uniform(k, shape, jnp.float32, -bound, bound)

    w1 = uniform(ks[0], (input_size, hidden), input_size)
    b1 = uniform(ks[1], (hidden,), input_size)
    w2 = uniform(ks[2], (hidden, hidden), hidden)
    b2 = uniform(ks[3], (hidden,), hidden)
    w3 = uniform(ks[4], (hidden, output_size), hidden)
    b3 = uniform(ks[5], (output_size,), hidden)
    return (w1, b1, w2, b2, w3, b3)


def network_ref(x, params):
    """Pure-JAX reference for verification."""
    w1, b1, w2, b2, w3, b3 = params
    h = jnp.maximum(x @ w1 + b1, 0.0)
    h = jnp.maximum(h @ w2 + b2, 0.0)
    return h @ w3 + b3


if __name__ == "__main__":
    key = jax.random.PRNGKey(0)
    k_x, k_p = jax.random.split(key)

    batch = 8
    input_size = 32   # e.g. flattened grid-state observation
    output_size = 4   # e.g. 4 grid-game actions

    x = jax.random.normal(k_x, (batch, input_size), jnp.float32)
    params = init_params(k_p, input_size, output_size)

    out = jax.block_until_ready(network_forward(x, params))
    ref = network_ref(x, params)
    assert out.shape == (batch, output_size)
    assert jnp.allclose(out, ref, atol=1e-5, rtol=1e-5), "mismatch vs reference"

    # Multi-step parallel grid path (also what v7x splits across its 2 TCs).
    big_B = 512
    xb = jax.random.normal(k_x, (big_B, input_size), jnp.float32)
    outb = jax.block_until_ready(network_forward(xb, params))
    refb = network_ref(xb, params)
    assert outb.shape == (big_B, output_size)
    assert jnp.allclose(outb, refb, atol=1e-5, rtol=1e-5), "mismatch (big batch)"

    # Batch not a multiple of 8 -> exercises the minimal alignment pad + slice.
    odd_B = 10
    xo = jax.random.normal(k_x, (odd_B, input_size), jnp.float32)
    outo = jax.block_until_ready(network_forward(xo, params))
    refo = network_ref(xo, params)
    assert outo.shape == (odd_B, output_size)
    assert jnp.allclose(outo, refo, atol=1e-5, rtol=1e-5), "mismatch (odd batch)"

    print("KERNEL_OK")
</pallas_src>

<mosaic_0001>
module attributes {stable_mosaic.version = 11 : i64} {
  func.func @mlp_kernel(%arg0: i32, %arg1: memref<8x32xf32, #tpu.memory_space<vmem>>, %arg2: memref<32x64xf32, #tpu.memory_space<vmem>>, %arg3: memref<1x64xf32, #tpu.memory_space<vmem>>, %arg4: memref<64x64xf32, #tpu.memory_space<vmem>>, %arg5: memref<1x64xf32, #tpu.memory_space<vmem>>, %arg6: memref<64x4xf32, #tpu.memory_space<vmem>>, %arg7: memref<1x4xf32, #tpu.memory_space<vmem>>, %arg8: memref<8x4xf32, #tpu.memory_space<vmem>>) attributes {dimension_semantics = [#tpu.dimension_semantics<parallel>], iteration_bounds = array<i64: 1>, scalar_prefetch = 0 : i64, scratch_operands = 0 : i64, tpu.core_type = #tpu.core_type<tc>, window_params = [{transform_indices = @transform_0, window_bounds = array<i64: 8, 32>}, {pipeline_mode = #tpu.pipeline_mode<synchronous>, transform_indices = @transform_1, window_bounds = array<i64: 32, 64>}, {pipeline_mode = #tpu.pipeline_mode<synchronous>, transform_indices = @transform_2, window_bounds = array<i64: 1, 64>}, {pipeline_mode = #tpu.pipeline_mode<synchronous>, transform_indices = @transform_3, window_bounds = array<i64: 64, 64>}, {pipeline_mode = #tpu.pipeline_mode<synchronous>, transform_indices = @transform_4, window_bounds = array<i64: 1, 64>}, {pipeline_mode = #tpu.pipeline_mode<synchronous>, transform_indices = @transform_5, window_bounds = array<i64: 64, 4>}, {pipeline_mode = #tpu.pipeline_mode<synchronous>, transform_indices = @transform_6, window_bounds = array<i64: 1, 4>}, {transform_indices = @transform_7, window_bounds = array<i64: 8, 4>}]} {
    %c0 = arith.constant 0 : index
    %c0_0 = arith.constant 0 : index
    %0 = vector.load %arg1[%c0, %c0_0] : memref<8x32xf32, #tpu.memory_space<vmem>>, vector<8x32xf32>
    %c0_1 = arith.constant 0 : index
    %c0_2 = arith.constant 0 : index
    %1 = vector.load %arg2[%c0_1, %c0_2] : memref<32x64xf32, #tpu.memory_space<vmem>>, vector<32x64xf32>
    %cst = arith.constant dense<0.000000e+00> : vector<8x64xf32>
    %2 = tpu.matmul %0, %1, %cst {dimension_numbers = #tpu.dot_dimension_numbers<[1], [0], [0], [1], [0, 0, 1, 1], [], []>} : vector<8x32xf32>, vector<32x64xf32>, vector<8x64xf32> -> vector<8x64xf32>
    %c0_3 = arith.constant 0 : index
    %c0_4 = arith.constant 0 : index
    %3 = vector.load %arg3[%c0_3, %c0_4] : memref<1x64xf32, #tpu.memory_space<vmem>>, vector<1x64xf32>
    %4 = vector.broadcast %3 : vector<1x64xf32> to vector<8x64xf32>
    %5 = arith.addf %2, %4 : vector<8x64xf32>
    %cst_5 = arith.constant 0.000000e+00 : f32
    %6 = vector.broadcast %cst_5 : f32 to vector<8x64xf32>
    %7 = arith.maximumf %5, %6 : vector<8x64xf32>
    %c0_6 = arith.constant 0 : index
    %c0_7 = arith.constant 0 : index
    %8 = vector.load %arg4[%c0_6, %c0_7] : memref<64x64xf32, #tpu.memory_space<vmem>>, vector<64x64xf32>
    %cst_8 = arith.constant dense<0.000000e+00> : vector<8x64xf32>
    %9 = tpu.matmul %7, %8, %cst_8 {dimension_numbers = #tpu.dot_dimension_numbers<[1], [0], [0], [1], [0, 0, 1, 1], [], []>} : vector<8x64xf32>, vector<64x64xf32>, vector<8x64xf32> -> vector<8x64xf32>
    %c0_9 = arith.constant 0 : index
    %c0_10 = arith.constant 0 : index
    %10 = vector.load %arg5[%c0_9, %c0_10] : memref<1x64xf32, #tpu.memory_space<vmem>>, vector<1x64xf32>
    %11 = vector.broadcast %10 : vector<1x64xf32> to vector<8x64xf32>
    %12 = arith.addf %9, %11 : vector<8x64xf32>
    %cst_11 = arith.constant 0.000000e+00 : f32
    %13 = vector.broadcast %cst_11 : f32 to vector<8x64xf32>
    %14 = arith.maximumf %12, %13 : vector<8x64xf32>
    %c0_12 = arith.constant 0 : index
    %c0_13 = arith.constant 0 : index
    %15 = vector.load %arg6[%c0_12, %c0_13] : memref<64x4xf32, #tpu.memory_space<vmem>>, vector<64x4xf32>
    %cst_14 = arith.constant dense<0.000000e+00> : vector<8x4xf32>
    %16 = tpu.matmul %14, %15, %cst_14 {dimension_numbers = #tpu.dot_dimension_numbers<[1], [0], [0], [1], [0, 0, 1, 1], [], []>} : vector<8x64xf32>, vector<64x4xf32>, vector<8x4xf32> -> vector<8x4xf32>
    %c0_15 = arith.constant 0 : index
    %c0_16 = arith.constant 0 : index
    %17 = vector.load %arg7[%c0_15, %c0_16] : memref<1x4xf32, #tpu.memory_space<vmem>>, vector<1x4xf32>
    %18 = vector.broadcast %17 : vector<1x4xf32> to vector<8x4xf32>
    %19 = arith.addf %16, %18 : vector<8x4xf32>
    %c0_17 = arith.constant 0 : index
    %c0_18 = arith.constant 0 : index
    %20 = vector.load %arg8[%c0_17, %c0_18] : memref<8x4xf32, #tpu.memory_space<vmem>>, vector<8x4xf32>
    tpu.vector_store %arg8[%c0_17, %c0_18], %19 {strides = array<i32>} : memref<8x4xf32, #tpu.memory_space<vmem>>, vector<8x4xf32>,
    return
  }
  func.func @transform_0(%arg0: i32) -> (i32, i32) {
    %c0_i32 = arith.constant 0 : i32
    %c0_i32_0 = arith.constant 0 : i32
    return %arg0, %c0_i32 : i32, i32
  }
  func.func @transform_1(%arg0: i32) -> (i32, i32) {
    %c0_i32 = arith.constant 0 : i32
    %c0_i32_0 = arith.constant 0 : i32
    %c0_i32_1 = arith.constant 0 : i32
    return %c0_i32, %c0_i32_0 : i32, i32
  }
  func.func @transform_2(%arg0: i32) -> (i32, i32) {
    %c0_i32 = arith.constant 0 : i32
    %c0_i32_0 = arith.constant 0 : i32
    %c0_i32_1 = arith.constant 0 : i32
    return %c0_i32, %c0_i32_0 : i32, i32
  }
  func.func @transform_3(%arg0: i32) -> (i32, i32) {
    %c0_i32 = arith.constant 0 : i32
    %c0_i32_0 = arith.constant 0 : i32
    %c0_i32_1 = arith.constant 0 : i32
    return %c0_i32, %c0_i32_0 : i32, i32
  }
  func.func @transform_4(%arg0: i32) -> (i32, i32) {
    %c0_i32 = arith.constant 0 : i32
    %c0_i32_0 = arith.constant 0 : i32
    %c0_i32_1 = arith.constant 0 : i32
    return %c0_i32, %c0_i32_0 : i32, i32
  }
  func.func @transform_5(%arg0: i32) -> (i32, i32) {
    %c0_i32 = arith.constant 0 : i32
    %c0_i32_0 = arith.constant 0 : i32
    %c0_i32_1 = arith.constant 0 : i32
    return %c0_i32, %c0_i32_0 : i32, i32
  }
  func.func @transform_6(%arg0: i32) -> (i32, i32) {
    %c0_i32 = arith.constant 0 : i32
    %c0_i32_0 = arith.constant 0 : i32
    %c0_i32_1 = arith.constant 0 : i32
    return %c0_i32, %c0_i32_0 : i32, i32
  }
  func.func @transform_7(%arg0: i32) -> (i32, i32) {
    %c0_i32 = arith.constant 0 : i32
    %c0_i32_0 = arith.constant 0 : i32
    return %arg0, %c0_i32 : i32, i32
  }
}

</mosaic_0001>

<bundles_post_ra>
// kernel: tpu_custom_call.1
= control target key start
LH: loop header
LB: loop body
LE: loop exit
PB: predicated region body
PF: predicated region fallthrough
CT: control target
= control target key end

     0   :  { %12 = vsyncpa [#allocation3], 0  ;;  %s342_s0 = inlined_call_operand.hbm [shape: f32[8,32], index: 0, kind: input, shape index: {}]   ;;  %s343_s1 = inlined_call_operand.hbm [shape: f32[32,64], index: 1, kind: input, shape index: {}]   ;;  %s344_s2 = inlined_call_operand.vmem [shape: f32[1,64], index: 2, kind: input, shape index: {}]   ;;  %s345_s3 = inlined_call_operand.vmem [shape: f32[64,64], index: 3, kind: input, shape index: {}]   ;;  %s346_s4 = inlined_call_operand.vmem [shape: f32[1,64], index: 4, kind: input, shape index: {}]   ;;  %s347_s5 = inlined_call_operand.vmem [shape: f32[64,4], index: 5, kind: input, shape index: {}]   ;;  %s348_s6 = inlined_call_operand.vmem [shape: f32[1,4], index: 6, kind: input, shape index: {}]   ;;  %s349_s7 = inlined_call_operand.vmem [shape: f32[8,4], index: 7, kind: output, shape index: {}]  }
   0x1   :  { %s19_s26 = sshll.u32 %s342_s0, 4  ;;  %s20_s26 = int_to_ptr.hbm [resolvable:$true] %s19_s26 }
   0x2   :  { %13 = vsyncpa [#allocation5], 0  ;;  %s232_s27 = smov [#allocation2]   ;;  %s29_s8 = sshll.u32 %s343_s1, 4  ;;  %s30_s8 = int_to_ptr.hbm [resolvable:$true] %s29_s8 }
   0x3   :  { %s21_s28 = sshll.u32 %s232_s27, 4  ;;  %s233_s9 = smov [#allocation4]   ;;  %s22_s28 = int_to_ptr.vmem [resolvable:$true] %s21_s28 }
   0x4   :  { %24 = dma.hbm_to_vmem [thread:$0]  %s20_s26, 128, %s22_s28, [#allocation3]  }
   0x5   :  { %s31_s10 = sshll.u32 %s233_s9, 4  ;;  %s234_s11 = smov 128   ;;  %s32_s10 = int_to_ptr.vmem [resolvable:$true] %s31_s10 }
   0x6   :  { %s235_s12 = smov 8  }
   0x7   :  { %37 = dma.hbm_to_vmem [thread:$0]  %s30_s8, 512, %s32_s10, [#allocation5], %s234_s11, %s234_s11, %s235_s12  }
   0x8   :  { %228 = dma.done.wait [#allocation3], 128  }
   0x9   :  { %229 = vsyncadd [#allocation3], 4294967168 }
   0xa   :  { %230 = dma.done.wait [#allocation5], 512  }
   0xb   :  { %231 = vsyncadd [#allocation5], 4294966784  ;;  %v60_v0 = vld [vmem:[#allocation4 + $0x18] sm:$0xff]  ;;  %v59_v1 = vld [vmem:[#allocation4 + $0x10] sm:$0xff]  ;;  %vm65_vm0 = vcmask 261120   ;;  %vm102_vm1 = vcmask 523264  }
   0xc   :  { %81 = vmatpush.msra.mxu0 %v60_v0  ;;  %v97_v2 = vld [vmem:[%s345_s3 + $0x38] sm:$0xff]  ;;  %v58_v3 = vld [vmem:[#allocation4 + $0x8] sm:$0xff]  ;;  %v95_v5 = vld [vmem:[%s345_s3 + $0x28] sm:$0xff]  ;;  %vm162_vm2 = vcmask 31744  }
   0xd   :  { %114 = vmatpush.msra.mxu1 %v97_v2  ;;  %v96_v4 = vld [vmem:[%s345_s3 + $0x30] sm:$0xff]  ;;  %v57_v6 = vld [vmem:[#allocation4] sm:$0xff]  ;;  %v56_v7 = vld [vmem:[#allocation2] sm:$0xff] }
   0xe   :  { %82 = vmatpush.msra.mxu0 %v59_v1  ;;  %v94_v8 = vld [vmem:[%s345_s3 + $0x20] sm:$0xff]  ;;  %v93_v9 = vld [vmem:[%s345_s3 + $0x18] sm:$0xff]  ;;  %v92_v10 = vld [vmem:[%s345_s3 + $0x10] sm:$0xff] }
   0xf   :  { %115 = vmatpush.msra.mxu1 %v96_v4  ;;  %v91_v11 = vld [vmem:[%s345_s3 + $0x8] sm:$0xff]  ;;  %v90_v12 = vld [vmem:[%s345_s3] sm:$0xff]  ;;  %v134_v13 = vld [vmem:[%s347_s5 + $0x38] sm:$0xff] }
  0x10   :  { %83 = vmatpush.msra.mxu0 %v58_v3  ;;  %v133_v14 = vld [vmem:[%s347_s5 + $0x30] sm:$0xff]  ;;  %150 = vmatpush.msra.mxu2 %v134_v13  ;;  %v132_v15 = vld [vmem:[%s347_s5 + $0x28] sm:$0xff]  ;;  %v131_v16 = vld [vmem:[%s347_s5 + $0x20] sm:$0xff] }
  0x11   :  { %116 = vmatpush.msra.mxu1 %v95_v5  ;;  %v130_v17 = vld [vmem:[%s347_s5 + $0x18] sm:$0xff]  ;;  %v177_v18 = vld [vmem:[%s344_s2] ss:$0 sm:$0xff]  ;;  %v129_v22 = vld [vmem:[%s347_s5 + $0x10] sm:$0xff] }
  0x12   :  { %84 = vmatpush.msra.mxu0 %v57_v6  ;;  %151 = vmatpush.msra.mxu2 %v133_v14  ;;  %v128_v23 = vld [vmem:[%s347_s5 + $0x8] sm:$0xff]  ;;  %v127_v24 = vld [vmem:[%s347_s5] sm:$0xff] }
  0x13   :  { %170 = vmatmul.msk.f32.vlgmr.msra.gmra.mxu0 %vm65_vm0, %v56_v7  ;;  %117 = vmatpush.msra.mxu1 %v94_v8  ;;  %v178_v25 = vld [vmem:[%s346_s4] ss:$0 sm:$0xff] }
  0x14   :  { %152 = vmatpush.msra.mxu2 %v132_v15  ;;  %v179_v29 = vld [vmem:[%s348_s6] ss:$0 sm:$0xff] }
  0x15   :  { %118 = vmatpush.msra.mxu1 %v93_v9 }
  0x16   :  { %153 = vmatpush.msra.mxu2 %v131_v16 }
  0x17   :  { %119 = vmatpush.msra.mxu1 %v92_v10 }
  0x18   :  { %154 = vmatpush.msra.mxu2 %v130_v17 }
  0x19   :  { %120 = vmatpush.msra.mxu1 %v91_v11 }
  0x1a   :  { %155 = vmatpush.msra.mxu2 %v129_v22 }
  0x1b   :  { %121 = vmatpush.msra.mxu1 %v90_v12 }
  0x1c   :  { %156 = vmatpush.msra.mxu2 %v128_v23 }
  0x1e   :  { %157 = vmatpush.msra.mxu2 %v127_v24 }
  0x90   :  { %v86_v19 = vpop.f32.mrf.mxu0 }
  0x91   :  { %v87_v20 = vadd.f32 %v177_v18, %v86_v19 }
  0x93   :  { %v89_v21 = vmax.f32 %v87_v20, 0.0 }
  0x95   :  { %171 = vmatmul.msk.f32.vlgmr.msra.gmra.mxu1 %vm102_vm1, %v89_v21 }
 0x112   :  { %v123_v26 = vpop.f32.mrf.mxu1 }
 0x113   :  { %v124_v27 = vadd.f32 %v178_v25, %v123_v26 }
 0x115   :  { %v126_v28 = vmax.f32 %v124_v27, 0.0 }
 0x117   :  { %172 = vmatmul.msk.f32.vlgmr.msra.gmra.mxu2 %vm102_vm1, %v126_v28 }
 0x19a   :  { %v159_v30 = vpop.f32.mrf.mxu2 }
 0x19b   :  { %v160_v31 = vadd.f32 %v179_v29, %v159_v30 }
 0x19d   :  { %163 = vst.msk [vmem:[%s349_s7] sm:$0xff] %vm162_vm2, %v160_v31 }
 0x19e   :  { %168 = vsyncpa [#allocation3], 1 }
 0x19f   :  { %169 = vsyncpa [#allocation5], 1 }

</bundles_post_ra>
